<compile_context>
chip_gen: v7x
topology: tpu7x:2x2x1
jax: 0.10.0
libtpu: 0.0.40
codegen_flags: <defaults>
</compile_context>

<pallas_src>
import math

import jax
import jax.numpy as jnp
from jax import lax
from jax.experimental import pallas as pl
from jax.experimental.pallas import tpu as pltpu


def make_lstm_kernel(num_layers, S, B_T, E, H, O_pad):
    G = 4 * H

    def kernel(bmax_ref, emb_ref, len_ref, *rest):
        layer_refs = rest[:3 * num_layers]            # per layer: wih (in_l,4H), whh (H,4H), b (1,4H)
        fcw_ref = rest[3 * num_layers]                # (H, O_pad)
        fcb_ref = rest[3 * num_layers + 1]            # (1, O_pad)
        out_ref = rest[3 * num_layers + 2]            # (L, B_T, O_pad)
        seq_buf = rest[3 * num_layers + 3]            # VMEM (S, B_T, H): layer-l hidden seq (input to l+1)
        xproj_buf = rest[3 * num_layers + 4]          # VMEM (S, B_T, 4H): hoisted x @ W_ih + b
        c_all = rest[3 * num_layers + 5]              # VMEM (L*B_T, H): stacked final cell states

        max_len = bmax_ref[pl.program_id(0)]          # per-batch-block loop bound (SMEM scalar)
        lengths = len_ref[...]                        # (B_T, 1) int32

        # deterministic input for padded timesteps of layers > 0
        seq_buf[...] = jnp.zeros_like(seq_buf)

        for l in range(num_layers):
            wih_ref = layer_refs[3 * l]
            whh_ref = layer_refs[3 * l + 1]
            b_ref = layer_refs[3 * l + 2]

            # hoisted input projection: one big MXU matmul over all timesteps (+ bias folded in)
            if l == 0:
                x2 = emb_ref[...].reshape(S * B_T, E)
            else:
                x2 = seq_buf[...].reshape(S * B_T, H)
            xp = jnp.dot(x2, wih_ref[...], preferred_element_type=jnp.float32) + b_ref[...]
            xproj_buf[...] = xp.reshape(S, B_T, G)

            def step(t, carry, whh_ref=whh_ref):
                h, c = carry
                # single fused recurrent matmul per step: (B_T, H) @ (H, 4H)
                g = xproj_buf[t] + jnp.dot(h, whh_ref[...], preferred_element_type=jnp.float32)
                i_g = jax.nn.sigmoid(g[:, 0:H])
                f_g = jax.nn.sigmoid(g[:, H:2 * H])
                g_g = jnp.tanh(g[:, 2 * H:3 * H])
                o_g = jax.nn.sigmoid(g[:, 3 * H:4 * H])
                c_new = f_g * c + i_g * g_g
                h_new = o_g * jnp.tanh(c_new)
                valid = t < lengths                              # (B_T, 1) bool
                h2 = jnp.where(valid, h_new, h)
                c2 = jnp.where(valid, c_new, c)
                seq_buf[t] = h2
                return (h2, c2)

            h0 = jnp.zeros((B_T, H), jnp.float32)
            c0 = jnp.zeros((B_T, H), jnp.float32)
            _, c_fin = lax.fori_loop(0, max_len, step, (h0, c0))
            c_all[l * B_T:(l + 1) * B_T, :] = c_fin

        # one stacked, lane-dense fc over all layers' final cell states (== fc1(hidden[-1]))
        res = jnp.dot(c_all[...], fcw_ref[...], preferred_element_type=jnp.float32) + fcb_ref[...]
        for l in range(num_layers):
            out_ref[l] = res[l * B_T:(l + 1) * B_T, :]

    return kernel


def packed_lstm_forward(x, input_length, params, *, num_layers, hidden_dim, output_size,
                        b_tile=8):
    S, B = x.shape
    V, E = params["embedding"].shape
    H = hidden_dim
    O = output_size
    G = 4 * H
    O_pad = ((O + 127) // 128) * 128
    nb = -(-B // b_tile)
    B_pad = nb * b_tile

    # Embedding gather in the wrapper -> (S, B, E); pad batch to sublane width.
    emb = params["embedding"][x].astype(jnp.float32)
    emb_p = jnp.zeros((S, B_pad, E), jnp.float32).at[:, :B, :].set(emb)

    lengths = input_length.astype(jnp.int32)
    len_p = jnp.zeros((B_pad, 1), jnp.int32).at[:B, 0].set(lengths)
    # per batch-block loop bound (clamped to S) -> dynamic early exit over padding
    block_max = jnp.minimum(jnp.max(len_p.reshape(nb, b_tile), axis=1), S).astype(jnp.int32)

    kernel_inputs = [emb_p, len_p]
    in_specs = [
        pl.BlockSpec((S, b_tile, E), lambda b, bm: (0, b, 0)),
        pl.BlockSpec((b_tile, 1), lambda b, bm: (b, 0)),
    ]
    for l in range(num_layers):
        in_l = E if l == 0 else H
        w_ih = params[f"weight_ih_l{l}"]                         # (4H, in_l), gate order i,f,g,o
        w_hh = params[f"weight_hh_l{l}"]                         # (4H, H)
        b_sum = params[f"bias_ih_l{l}"] + params[f"bias_hh_l{l}"]
        kernel_inputs += [
            w_ih.T.astype(jnp.float32),                          # (in_l, 4H) fused gates along lanes
            w_hh.T.astype(jnp.float32),                          # (H, 4H)
            b_sum.reshape(1, G).astype(jnp.float32),             # (1, 4H)
        ]
        in_specs += [
            pl.BlockSpec((in_l, G), lambda b, bm: (0, 0)),
            pl.BlockSpec((H, G), lambda b, bm: (0, 0)),
            pl.BlockSpec((1, G), lambda b, bm: (0, 0)),
        ]
    fc_w = jnp.zeros((H, O_pad), jnp.float32).at[:, :O].set(params["fc_w"].T)
    fc_b = jnp.zeros((1, O_pad), jnp.float32).at[0, :O].set(params["fc_b"])
    kernel_inputs += [fc_w, fc_b]
    in_specs += [
        pl.BlockSpec((H, O_pad), lambda b, bm: (0, 0)),
        pl.BlockSpec((1, O_pad), lambda b, bm: (0, 0)),
    ]

    kernel = make_lstm_kernel(num_layers, S, b_tile, E, H, O_pad)

    out = pl.pallas_call(
        kernel,
        out_shape=jax.ShapeDtypeStruct((num_layers, B_pad, O_pad), jnp.float32),
        grid_spec=pltpu.PrefetchScalarGridSpec(
            num_scalar_prefetch=1,
            grid=(nb,),
            in_specs=in_specs,
            out_specs=pl.BlockSpec((num_layers, b_tile, O_pad), lambda b, bm: (0, b, 0)),
            scratch_shapes=[
                pltpu.VMEM((S, b_tile, H), jnp.float32),               # seq_buf
                pltpu.VMEM((S, b_tile, G), jnp.float32),               # hoisted x-projection
                pltpu.VMEM((num_layers * b_tile, H), jnp.float32),     # stacked final cell states
            ],
        ),
        compiler_params=pltpu.CompilerParams(
            dimension_semantics=("parallel",),
            vmem_limit_bytes=32 * 1024 * 1024,
        ),
    )(block_max, *kernel_inputs)

    return out[:, :B, :O]


def reference_forward(x, input_length, params, *, num_layers, hidden_dim):
    """Pure-JAX reference mirroring the PyTorch packed-LSTM forward."""
    S, B = x.shape
    H = hidden_dim
    inp = params["embedding"][x]                                # (S, B, E)
    c_finals = []
    for l in range(num_layers):
        w_ih = params[f"weight_ih_l{l}"]
        w_hh = params[f"weight_hh_l{l}"]
        b = params[f"bias_ih_l{l}"] + params[f"bias_hh_l{l}"]
        h = jnp.zeros((B, H), jnp.float32)
        c = jnp.zeros((B, H), jnp.float32)
        outs = []
        for t in range(S):
            g = inp[t] @ w_ih.T + h @ w_hh.T + b
            i_g = jax.nn.sigmoid(g[:, 0:H])
            f_g = jax.nn.sigmoid(g[:, H:2 * H])
            g_g = jnp.tanh(g[:, 2 * H:3 * H])
            o_g = jax.nn.sigmoid(g[:, 3 * H:4 * H])
            c_new = f_g * c + i_g * g_g
            h_new = o_g * jnp.tanh(c_new)
            m = (t < input_length)[:, None].astype(jnp.float32)
            h = m * h_new + (1.0 - m) * h
            c = m * c_new + (1.0 - m) * c
            outs.append(h)
        inp = jnp.stack(outs, axis=0)
        c_finals.append(c)
    c_n = jnp.stack(c_finals, axis=0)                           # (L, B, H)
    return c_n @ params["fc_w"].T + params["fc_b"]


if __name__ == "__main__":
    # module hyper-params: input_size (vocab) V, output_size O, embedding_dim E,
    # hidden_dim H, num_layers L
    V, O, E, H, L = 16, 4, 32, 32, 2
    S, B = 8, 2                                                 # seq len, batch

    key = jax.random.PRNGKey(0)
    ks = iter(jax.random.split(key, 32))
    stdv = 1.0 / math.sqrt(H)

    params = {
        "embedding": jax.random.normal(next(ks), (V, E), jnp.float32),
        "fc_w": jax.random.uniform(next(ks), (O, H), jnp.float32, -stdv, stdv),
        "fc_b": jax.random.uniform(next(ks), (O,), jnp.float32, -stdv, stdv),
    }
    for l in range(L):
        in_l = E if l == 0 else H
        params[f"weight_ih_l{l}"] = jax.random.uniform(next(ks), (4 * H, in_l), jnp.float32, -stdv, stdv)
        params[f"weight_hh_l{l}"] = jax.random.uniform(next(ks), (4 * H, H), jnp.float32, -stdv, stdv)
        params[f"bias_ih_l{l}"] = jax.random.uniform(next(ks), (4 * H,), jnp.float32, -stdv, stdv)
        params[f"bias_hh_l{l}"] = jax.random.uniform(next(ks), (4 * H,), jnp.float32, -stdv, stdv)

    x = jax.random.randint(next(ks), (S, B), 0, V, dtype=jnp.int32)     # (seq, batch) token ids
    input_length = jnp.array([8, 5], dtype=jnp.int32)                   # descending (enforce_sorted)

    out = packed_lstm_forward(x, input_length, params,
                              num_layers=L, hidden_dim=H, output_size=O)
    out = jax.block_until_ready(out)

    ref = reference_forward(x, input_length, params, num_layers=L, hidden_dim=H)
    assert out.shape == (L, B, O)
    assert jnp.allclose(out, ref, atol=1e-3, rtol=1e-3), (out, ref)
    print("KERNEL_OK")
</pallas_src>

<mosaic_0001>
module attributes {stable_mosaic.version = 11 : i64} {
  func.func @kernel(%arg0: i32, %arg1: memref<1xi32, #tpu.memory_space<smem>>, %arg2: memref<8x8x32xf32, #tpu.memory_space<vmem>>, %arg3: memref<8x1xi32, #tpu.memory_space<vmem>>, %arg4: memref<32x128xf32, #tpu.memory_space<vmem>>, %arg5: memref<32x128xf32, #tpu.memory_space<vmem>>, %arg6: memref<1x128xf32, #tpu.memory_space<vmem>>, %arg7: memref<32x128xf32, #tpu.memory_space<vmem>>, %arg8: memref<32x128xf32, #tpu.memory_space<vmem>>, %arg9: memref<1x128xf32, #tpu.memory_space<vmem>>, %arg10: memref<32x128xf32, #tpu.memory_space<vmem>>, %arg11: memref<1x128xf32, #tpu.memory_space<vmem>>, %arg12: memref<2x8x128xf32, #tpu.memory_space<vmem>>, %arg13: memref<8x8x32xf32, #tpu.memory_space<vmem>>, %arg14: memref<8x8x128xf32, #tpu.memory_space<vmem>>, %arg15: memref<16x32xf32, #tpu.memory_space<vmem>>) attributes {dimension_semantics = [#tpu.dimension_semantics<parallel>], iteration_bounds = array<i64: 1>, scalar_prefetch = 1 : i64, scratch_operands = 3 : i64, tpu.core_type = #tpu.core_type<tc>, window_params = [{transform_indices = @transform_0, window_bounds = array<i64: 8, 8, 32>}, {transform_indices = @transform_1, window_bounds = array<i64: 8, 1>}, {pipeline_mode = #tpu.pipeline_mode<synchronous>, transform_indices = @transform_2, window_bounds = array<i64: 32, 128>}, {pipeline_mode = #tpu.pipeline_mode<synchronous>, transform_indices = @transform_3, window_bounds = array<i64: 32, 128>}, {pipeline_mode = #tpu.pipeline_mode<synchronous>, transform_indices = @transform_4, window_bounds = array<i64: 1, 128>}, {pipeline_mode = #tpu.pipeline_mode<synchronous>, transform_indices = @transform_5, window_bounds = array<i64: 32, 128>}, {pipeline_mode = #tpu.pipeline_mode<synchronous>, transform_indices = @transform_6, window_bounds = array<i64: 32, 128>}, {pipeline_mode = #tpu.pipeline_mode<synchronous>, transform_indices = @transform_7, window_bounds = array<i64: 1, 128>}, {pipeline_mode = #tpu.pipeline_mode<synchronous>, transform_indices = @transform_8, window_bounds = array<i64: 32, 128>}, {pipeline_mode = #tpu.pipeline_mode<synchronous>, transform_indices = @transform_9, window_bounds = array<i64: 1, 128>}, {transform_indices = @transform_10, window_bounds = array<i64: 2, 8, 128>}]} {
    %0 = arith.index_cast %arg0 : i32 to index
    %1 = memref.load %arg1[%0] : memref<1xi32, #tpu.memory_space<smem>>
    %c0 = arith.constant 0 : index
    %c0_0 = arith.constant 0 : index
    %2 = vector.load %arg3[%c0, %c0_0] : memref<8x1xi32, #tpu.memory_space<vmem>>, vector<8x1xi32>
    %cst = arith.constant 0.000000e+00 : f32
    %3 = vector.broadcast %cst : f32 to vector<8x8x32xf32>
    %c0_1 = arith.constant 0 : index
    %c0_2 = arith.constant 0 : index
    %c0_3 = arith.constant 0 : index
    %4 = vector.load %arg13[%c0_1, %c0_2, %c0_3] : memref<8x8x32xf32, #tpu.memory_space<vmem>>, vector<8x8x32xf32>
    tpu.vector_store %arg13[%c0_1, %c0_2, %c0_3], %3 {strides = array<i32>} : memref<8x8x32xf32, #tpu.memory_space<vmem>>, vector<8x8x32xf32>,
    %c0_4 = arith.constant 0 : index
    %c0_5 = arith.constant 0 : index
    %c0_6 = arith.constant 0 : index
    %5 = vector.load %arg2[%c0_4, %c0_5, %c0_6] : memref<8x8x32xf32, #tpu.memory_space<vmem>>, vector<8x8x32xf32>
    %6 = vector.shape_cast %5 : vector<8x8x32xf32> to vector<64x32xf32>
    %c0_7 = arith.constant 0 : index
    %c0_8 = arith.constant 0 : index
    %7 = vector.load %arg4[%c0_7, %c0_8] : memref<32x128xf32, #tpu.memory_space<vmem>>, vector<32x128xf32>
    %cst_9 = arith.constant dense<0.000000e+00> : vector<64x128xf32>
    %8 = tpu.matmul %6, %7, %cst_9 {dimension_numbers = #tpu.dot_dimension_numbers<[1], [0], [0], [1], [0, 0, 1, 1], [], []>} : vector<64x32xf32>, vector<32x128xf32>, vector<64x128xf32> -> vector<64x128xf32>
    %c0_10 = arith.constant 0 : index
    %c0_11 = arith.constant 0 : index
    %9 = vector.load %arg6[%c0_10, %c0_11] : memref<1x128xf32, #tpu.memory_space<vmem>>, vector<1x128xf32>
    %10 = vector.broadcast %9 : vector<1x128xf32> to vector<64x128xf32>
    %11 = arith.addf %8, %10 : vector<64x128xf32>
    %12 = vector.shape_cast %11 : vector<64x128xf32> to vector<8x8x128xf32>
    %c0_12 = arith.constant 0 : index
    %c0_13 = arith.constant 0 : index
    %c0_14 = arith.constant 0 : index
    %13 = vector.load %arg14[%c0_12, %c0_13, %c0_14] : memref<8x8x128xf32, #tpu.memory_space<vmem>>, vector<8x8x128xf32>
    tpu.vector_store %arg14[%c0_12, %c0_13, %c0_14], %12 {strides = array<i32>} : memref<8x8x128xf32, #tpu.memory_space<vmem>>, vector<8x8x128xf32>,
    %cst_15 = arith.constant 0.000000e+00 : f32
    %14 = vector.broadcast %cst_15 : f32 to vector<8x32xf32>
    %cst_16 = arith.constant 0.000000e+00 : f32
    %15 = vector.broadcast %cst_16 : f32 to vector<8x32xf32>
    %c0_i32 = arith.constant 0 : i32
    %16 = arith.subi %1, %c0_i32 : i32
    %17 = arith.addi %c0_i32, %16 : i32
    %c1_i32 = arith.constant 1 : i32
    %18:2 = scf.for %arg16 = %c0_i32 to %17 step %c1_i32 iter_args(%arg17 = %14, %arg18 = %15) -> (vector<8x32xf32>, vector<8x32xf32>)  : i32 {
      %49 = arith.index_cast %arg16 : i32 to index
      %c0_47 = arith.constant 0 : index
      %c0_48 = arith.constant 0 : index
      %50 = vector.load %arg14[%49, %c0_47, %c0_48] : memref<8x8x128xf32, #tpu.memory_space<vmem>>, vector<1x8x128xf32>
      %51 = vector.shape_cast %50 : vector<1x8x128xf32> to vector<8x128xf32>
      %c0_49 = arith.constant 0 : index
      %c0_50 = arith.constant 0 : index
      %52 = vector.load %arg5[%c0_49, %c0_50] : memref<32x128xf32, #tpu.memory_space<vmem>>, vector<32x128xf32>
      %cst_51 = arith.constant dense<0.000000e+00> : vector<8x128xf32>
      %53 = tpu.matmul %arg17, %52, %cst_51 {dimension_numbers = #tpu.dot_dimension_numbers<[1], [0], [0], [1], [0, 0, 1, 1], [], []>} : vector<8x32xf32>, vector<32x128xf32>, vector<8x128xf32> -> vector<8x128xf32>
      %54 = arith.addf %51, %53 : vector<8x128xf32>
      %55 = vector.extract_strided_slice %54 {offsets = [0, 0], sizes = [8, 32], strides = [1, 1]} : vector<8x128xf32> to vector<8x32xf32>
      %56 = arith.negf %55 : vector<8x32xf32>
      %57 = math.exp %56 : vector<8x32xf32>
      %cst_52 = arith.constant 1.000000e+00 : f32
      %58 = vector.broadcast %cst_52 : f32 to vector<8x32xf32>
      %59 = arith.addf %58, %57 : vector<8x32xf32>
      %60 = arith.divf %58, %59 : vector<8x32xf32>
      %61 = vector.extract_strided_slice %54 {offsets = [0, 32], sizes = [8, 32], strides = [1, 1]} : vector<8x128xf32> to vector<8x32xf32>
      %62 = arith.negf %61 : vector<8x32xf32>
      %63 = math.exp %62 : vector<8x32xf32>
      %cst_53 = arith.constant 1.000000e+00 : f32
      %64 = vector.broadcast %cst_53 : f32 to vector<8x32xf32>
      %65 = arith.addf %64, %63 : vector<8x32xf32>
      %66 = arith.divf %64, %65 : vector<8x32xf32>
      %67 = vector.extract_strided_slice %54 {offsets = [0, 64], sizes = [8, 32], strides = [1, 1]} : vector<8x128xf32> to vector<8x32xf32>
      %68 = math.tanh %67 : vector<8x32xf32>
      %69 = vector.extract_strided_slice %54 {offsets = [0, 96], sizes = [8, 32], strides = [1, 1]} : vector<8x128xf32> to vector<8x32xf32>
      %70 = arith.negf %69 : vector<8x32xf32>
      %71 = math.exp %70 : vector<8x32xf32>
      %cst_54 = arith.constant 1.000000e+00 : f32
      %72 = vector.broadcast %cst_54 : f32 to vector<8x32xf32>
      %73 = arith.addf %72, %71 : vector<8x32xf32>
      %74 = arith.divf %72, %73 : vector<8x32xf32>
      %75 = arith.mulf %66, %arg18 : vector<8x32xf32>
      %76 = arith.mulf %60, %68 : vector<8x32xf32>
      %77 = arith.addf %75, %76 : vector<8x32xf32>
      %78 = math.tanh %77 : vector<8x32xf32>
      %79 = arith.mulf %74, %78 : vector<8x32xf32>
      %80 = vector.broadcast %arg16 : i32 to vector<8x1xi32>
      %81 = arith.cmpi slt, %80, %2 : vector<8x1xi32>
      %82 = vector.shape_cast %81 : vector<8x1xi1> to vector<8x1xi1>
      %83 = vector.broadcast %82 : vector<8x1xi1> to vector<8x32xi1>
      %84 = arith.select %83, %79, %arg17 : vector<8x32xi1>, vector<8x32xf32>
      %85 = vector.shape_cast %81 : vector<8x1xi1> to vector<8x1xi1>
      %86 = vector.broadcast %85 : vector<8x1xi1> to vector<8x32xi1>
      %87 = arith.select %86, %77, %arg18 : vector<8x32xi1>, vector<8x32xf32>
      %88 = arith.index_cast %arg16 : i32 to index
      %c0_55 = arith.constant 0 : index
      %c0_56 = arith.constant 0 : index
      %89 = vector.load %arg13[%88, %c0_55, %c0_56] : memref<8x8x32xf32, #tpu.memory_space<vmem>>, vector<1x8x32xf32>
      %90 = vector.shape_cast %89 : vector<1x8x32xf32> to vector<8x32xf32>
      %91 = vector.shape_cast %84 : vector<8x32xf32> to vector<1x8x32xf32>
      tpu.vector_store %arg13[%88, %c0_55, %c0_56], %91 {strides = array<i32>} : memref<8x8x32xf32, #tpu.memory_space<vmem>>, vector<1x8x32xf32>,
      scf.yield %84, %87 : vector<8x32xf32>, vector<8x32xf32>
    }
    %c0_17 = arith.constant 0 : index
    %c0_18 = arith.constant 0 : index
    %19 = vector.load %arg15[%c0_17, %c0_18] : memref<16x32xf32, #tpu.memory_space<vmem>>, vector<8x32xf32>
    tpu.vector_store %arg15[%c0_17, %c0_18], %18#1 {strides = array<i32>} : memref<16x32xf32, #tpu.memory_space<vmem>>, vector<8x32xf32>,
    %c0_19 = arith.constant 0 : index
    %c0_20 = arith.constant 0 : index
    %c0_21 = arith.constant 0 : index
    %20 = vector.load %arg13[%c0_19, %c0_20, %c0_21] : memref<8x8x32xf32, #tpu.memory_space<vmem>>, vector<8x8x32xf32>
    %21 = vector.shape_cast %20 : vector<8x8x32xf32> to vector<64x32xf32>
    %c0_22 = arith.constant 0 : index
    %c0_23 = arith.constant 0 : index
    %22 = vector.load %arg7[%c0_22, %c0_23] : memref<32x128xf32, #tpu.memory_space<vmem>>, vector<32x128xf32>
    %cst_24 = arith.constant dense<0.000000e+00> : vector<64x128xf32>
    %23 = tpu.matmul %21, %22, %cst_24 {dimension_numbers = #tpu.dot_dimension_numbers<[1], [0], [0], [1], [0, 0, 1, 1], [], []>} : vector<64x32xf32>, vector<32x128xf32>, vector<64x128xf32> -> vector<64x128xf32>
    %c0_25 = arith.constant 0 : index
    %c0_26 = arith.constant 0 : index
    %24 = vector.load %arg9[%c0_25, %c0_26] : memref<1x128xf32, #tpu.memory_space<vmem>>, vector<1x128xf32>
    %25 = vector.broadcast %24 : vector<1x128xf32> to vector<64x128xf32>
    %26 = arith.addf %23, %25 : vector<64x128xf32>
    %27 = vector.shape_cast %26 : vector<64x128xf32> to vector<8x8x128xf32>
    %c0_27 = arith.constant 0 : index
    %c0_28 = arith.constant 0 : index
    %c0_29 = arith.constant 0 : index
    %28 = vector.load %arg14[%c0_27, %c0_28, %c0_29] : memref<8x8x128xf32, #tpu.memory_space<vmem>>, vector<8x8x128xf32>
    tpu.vector_store %arg14[%c0_27, %c0_28, %c0_29], %27 {strides = array<i32>} : memref<8x8x128xf32, #tpu.memory_space<vmem>>, vector<8x8x128xf32>,
    %cst_30 = arith.constant 0.000000e+00 : f32
    %29 = vector.broadcast %cst_30 : f32 to vector<8x32xf32>
    %cst_31 = arith.constant 0.000000e+00 : f32
    %30 = vector.broadcast %cst_31 : f32 to vector<8x32xf32>
    %c0_i32_32 = arith.constant 0 : i32
    %31 = arith.subi %1, %c0_i32_32 : i32
    %32 = arith.addi %c0_i32_32, %31 : i32
    %c1_i32_33 = arith.constant 1 : i32
    %33:2 = scf.for %arg16 = %c0_i32_32 to %32 step %c1_i32_33 iter_args(%arg17 = %29, %arg18 = %30) -> (vector<8x32xf32>, vector<8x32xf32>)  : i32 {
      %49 = arith.index_cast %arg16 : i32 to index
      %c0_47 = arith.constant 0 : index
      %c0_48 = arith.constant 0 : index
      %50 = vector.load %arg14[%49, %c0_47, %c0_48] : memref<8x8x128xf32, #tpu.memory_space<vmem>>, vector<1x8x128xf32>
      %51 = vector.shape_cast %50 : vector<1x8x128xf32> to vector<8x128xf32>
      %c0_49 = arith.constant 0 : index
      %c0_50 = arith.constant 0 : index
      %52 = vector.load %arg8[%c0_49, %c0_50] : memref<32x128xf32, #tpu.memory_space<vmem>>, vector<32x128xf32>
      %cst_51 = arith.constant dense<0.000000e+00> : vector<8x128xf32>
      %53 = tpu.matmul %arg17, %52, %cst_51 {dimension_numbers = #tpu.dot_dimension_numbers<[1], [0], [0], [1], [0, 0, 1, 1], [], []>} : vector<8x32xf32>, vector<32x128xf32>, vector<8x128xf32> -> vector<8x128xf32>
      %54 = arith.addf %51, %53 : vector<8x128xf32>
      %55 = vector.extract_strided_slice %54 {offsets = [0, 0], sizes = [8, 32], strides = [1, 1]} : vector<8x128xf32> to vector<8x32xf32>
      %56 = arith.negf %55 : vector<8x32xf32>
      %57 = math.exp %56 : vector<8x32xf32>
      %cst_52 = arith.constant 1.000000e+00 : f32
      %58 = vector.broadcast %cst_52 : f32 to vector<8x32xf32>
      %59 = arith.addf %58, %57 : vector<8x32xf32>
      %60 = arith.divf %58, %59 : vector<8x32xf32>
      %61 = vector.extract_strided_slice %54 {offsets = [0, 32], sizes = [8, 32], strides = [1, 1]} : vector<8x128xf32> to vector<8x32xf32>
      %62 = arith.negf %61 : vector<8x32xf32>
      %63 = math.exp %62 : vector<8x32xf32>
      %cst_53 = arith.constant 1.000000e+00 : f32
      %64 = vector.broadcast %cst_53 : f32 to vector<8x32xf32>
      %65 = arith.addf %64, %63 : vector<8x32xf32>
      %66 = arith.divf %64, %65 : vector<8x32xf32>
      %67 = vector.extract_strided_slice %54 {offsets = [0, 64], sizes = [8, 32], strides = [1, 1]} : vector<8x128xf32> to vector<8x32xf32>
      %68 = math.tanh %67 : vector<8x32xf32>
      %69 = vector.extract_strided_slice %54 {offsets = [0, 96], sizes = [8, 32], strides = [1, 1]} : vector<8x128xf32> to vector<8x32xf32>
      %70 = arith.negf %69 : vector<8x32xf32>
      %71 = math.exp %70 : vector<8x32xf32>
      %cst_54 = arith.constant 1.000000e+00 : f32
      %72 = vector.broadcast %cst_54 : f32 to vector<8x32xf32>
      %73 = arith.addf %72, %71 : vector<8x32xf32>
      %74 = arith.divf %72, %73 : vector<8x32xf32>
      %75 = arith.mulf %66, %arg18 : vector<8x32xf32>
      %76 = arith.mulf %60, %68 : vector<8x32xf32>
      %77 = arith.addf %75, %76 : vector<8x32xf32>
      %78 = math.tanh %77 : vector<8x32xf32>
      %79 = arith.mulf %74, %78 : vector<8x32xf32>
      %80 = vector.broadcast %arg16 : i32 to vector<8x1xi32>
      %81 = arith.cmpi slt, %80, %2 : vector<8x1xi32>
      %82 = vector.shape_cast %81 : vector<8x1xi1> to vector<8x1xi1>
      %83 = vector.broadcast %82 : vector<8x1xi1> to vector<8x32xi1>
      %84 = arith.select %83, %79, %arg17 : vector<8x32xi1>, vector<8x32xf32>
      %85 = vector.shape_cast %81 : vector<8x1xi1> to vector<8x1xi1>
      %86 = vector.broadcast %85 : vector<8x1xi1> to vector<8x32xi1>
      %87 = arith.select %86, %77, %arg18 : vector<8x32xi1>, vector<8x32xf32>
      %88 = arith.index_cast %arg16 : i32 to index
      %c0_55 = arith.constant 0 : index
      %c0_56 = arith.constant 0 : index
      %89 = vector.load %arg13[%88, %c0_55, %c0_56] : memref<8x8x32xf32, #tpu.memory_space<vmem>>, vector<1x8x32xf32>
      %90 = vector.shape_cast %89 : vector<1x8x32xf32> to vector<8x32xf32>
      %91 = vector.shape_cast %84 : vector<8x32xf32> to vector<1x8x32xf32>
      tpu.vector_store %arg13[%88, %c0_55, %c0_56], %91 {strides = array<i32>} : memref<8x8x32xf32, #tpu.memory_space<vmem>>, vector<1x8x32xf32>,
      scf.yield %84, %87 : vector<8x32xf32>, vector<8x32xf32>
    }
    %c8 = arith.constant 8 : index
    %c0_34 = arith.constant 0 : index
    %34 = vector.load %arg15[%c8, %c0_34] : memref<16x32xf32, #tpu.memory_space<vmem>>, vector<8x32xf32>
    tpu.vector_store %arg15[%c8, %c0_34], %33#1 {strides = array<i32>} : memref<16x32xf32, #tpu.memory_space<vmem>>, vector<8x32xf32>,
    %c0_35 = arith.constant 0 : index
    %c0_36 = arith.constant 0 : index
    %35 = vector.load %arg15[%c0_35, %c0_36] : memref<16x32xf32, #tpu.memory_space<vmem>>, vector<16x32xf32>
    %c0_37 = arith.constant 0 : index
    %c0_38 = arith.constant 0 : index
    %36 = vector.load %arg10[%c0_37, %c0_38] : memref<32x128xf32, #tpu.memory_space<vmem>>, vector<32x128xf32>
    %cst_39 = arith.constant dense<0.000000e+00> : vector<16x128xf32>
    %37 = tpu.matmul %35, %36, %cst_39 {dimension_numbers = #tpu.dot_dimension_numbers<[1], [0], [0], [1], [0, 0, 1, 1], [], []>} : vector<16x32xf32>, vector<32x128xf32>, vector<16x128xf32> -> vector<16x128xf32>
    %c0_40 = arith.constant 0 : index
    %c0_41 = arith.constant 0 : index
    %38 = vector.load %arg11[%c0_40, %c0_41] : memref<1x128xf32, #tpu.memory_space<vmem>>, vector<1x128xf32>
    %39 = vector.broadcast %38 : vector<1x128xf32> to vector<16x128xf32>
    %40 = arith.addf %37, %39 : vector<16x128xf32>
    %41 = vector.extract_strided_slice %40 {offsets = [0, 0], sizes = [8, 128], strides = [1, 1]} : vector<16x128xf32> to vector<8x128xf32>
    %c0_42 = arith.constant 0 : index
    %c0_43 = arith.constant 0 : index
    %c0_44 = arith.constant 0 : index
    %42 = vector.load %arg12[%c0_42, %c0_43, %c0_44] : memref<2x8x128xf32, #tpu.memory_space<vmem>>, vector<1x8x128xf32>
    %43 = vector.shape_cast %42 : vector<1x8x128xf32> to vector<8x128xf32>
    %44 = vector.shape_cast %41 : vector<8x128xf32> to vector<1x8x128xf32>
    tpu.vector_store %arg12[%c0_42, %c0_43, %c0_44], %44 {strides = array<i32>} : memref<2x8x128xf32, #tpu.memory_space<vmem>>, vector<1x8x128xf32>,
    %45 = vector.extract_strided_slice %40 {offsets = [8, 0], sizes = [8, 128], strides = [1, 1]} : vector<16x128xf32> to vector<8x128xf32>
    %c1 = arith.constant 1 : index
    %c0_45 = arith.constant 0 : index
    %c0_46 = arith.constant 0 : index
    %46 = vector.load %arg12[%c1, %c0_45, %c0_46] : memref<2x8x128xf32, #tpu.memory_space<vmem>>, vector<1x8x128xf32>
    %47 = vector.shape_cast %46 : vector<1x8x128xf32> to vector<8x128xf32>
    %48 = vector.shape_cast %45 : vector<8x128xf32> to vector<1x8x128xf32>
    tpu.vector_store %arg12[%c1, %c0_45, %c0_46], %48 {strides = array<i32>} : memref<2x8x128xf32, #tpu.memory_space<vmem>>, vector<1x8x128xf32>,
    return
  }
  func.func @transform_0(%arg0: i32, %arg1: memref<1xi32, #tpu.memory_space<smem>>) -> (i32, i32, i32) {
    %c0_i32 = arith.constant 0 : i32
    %c0_i32_0 = arith.constant 0 : i32
    %c0_i32_1 = arith.constant 0 : i32
    return %c0_i32, %arg0, %c0_i32_0 : i32, i32, i32
  }
  func.func @transform_1(%arg0: i32, %arg1: memref<1xi32, #tpu.memory_space<smem>>) -> (i32, i32) {
    %c0_i32 = arith.constant 0 : i32
    %c0_i32_0 = arith.constant 0 : i32
    return %arg0, %c0_i32 : i32, i32
  }
  func.func @transform_2(%arg0: i32, %arg1: memref<1xi32, #tpu.memory_space<smem>>) -> (i32, i32) {
    %c0_i32 = arith.constant 0 : i32
    %c0_i32_0 = arith.constant 0 : i32
    %c0_i32_1 = arith.constant 0 : i32
    return %c0_i32, %c0_i32_0 : i32, i32
  }
  func.func @transform_3(%arg0: i32, %arg1: memref<1xi32, #tpu.memory_space<smem>>) -> (i32, i32) {
    %c0_i32 = arith.constant 0 : i32
    %c0_i32_0 = arith.constant 0 : i32
    %c0_i32_1 = arith.constant 0 : i32
    return %c0_i32, %c0_i32_0 : i32, i32
  }
  func.func @transform_4(%arg0: i32, %arg1: memref<1xi32, #tpu.memory_space<smem>>) -> (i32, i32) {
    %c0_i32 = arith.constant 0 : i32
    %c0_i32_0 = arith.constant 0 : i32
    %c0_i32_1 = arith.constant 0 : i32
    return %c0_i32, %c0_i32_0 : i32, i32
  }
  func.func @transform_5(%arg0: i32, %arg1: memref<1xi32, #tpu.memory_space<smem>>) -> (i32, i32) {
    %c0_i32 = arith.constant 0 : i32
    %c0_i32_0 = arith.constant 0 : i32
    %c0_i32_1 = arith.constant 0 : i32
    return %c0_i32, %c0_i32_0 : i32, i32
  }
  func.func @transform_6(%arg0: i32, %arg1: memref<1xi32, #tpu.memory_space<smem>>) -> (i32, i32) {
    %c0_i32 = arith.constant 0 : i32
    %c0_i32_0 = arith.constant 0 : i32
    %c0_i32_1 = arith.constant 0 : i32
    return %c0_i32, %c0_i32_0 : i32, i32
  }
  func.func @transform_7(%arg0: i32, %arg1: memref<1xi32, #tpu.memory_space<smem>>) -> (i32, i32) {
    %c0_i32 = arith.constant 0 : i32
    %c0_i32_0 = arith.constant 0 : i32
    %c0_i32_1 = arith.constant 0 : i32
    return %c0_i32, %c0_i32_0 : i32, i32
  }
  func.func @transform_8(%arg0: i32, %arg1: memref<1xi32, #tpu.memory_space<smem>>) -> (i32, i32) {
    %c0_i32 = arith.constant 0 : i32
    %c0_i32_0 = arith.constant 0 : i32
    %c0_i32_1 = arith.constant 0 : i32
    return %c0_i32, %c0_i32_0 : i32, i32
  }
  func.func @transform_9(%arg0: i32, %arg1: memref<1xi32, #tpu.memory_space<smem>>) -> (i32, i32) {
    %c0_i32 = arith.constant 0 : i32
    %c0_i32_0 = arith.constant 0 : i32
    %c0_i32_1 = arith.constant 0 : i32
    return %c0_i32, %c0_i32_0 : i32, i32
  }
  func.func @transform_10(%arg0: i32, %arg1: memref<1xi32, #tpu.memory_space<smem>>) -> (i32, i32, i32) {
    %c0_i32 = arith.constant 0 : i32
    %c0_i32_0 = arith.constant 0 : i32
    %c0_i32_1 = arith.constant 0 : i32
    return %c0_i32, %arg0, %c0_i32_0 : i32, i32, i32
  }
}

</mosaic_0001>

<bundles_post_ra>
// kernel: tpu_custom_call.1
= control target key start
LH: loop header
LB: loop body
LE: loop exit
PB: predicated region body
PF: predicated region fallthrough
CT: control target
= control target key end

     0   :  { %17 = vsyncpa [#allocation8], 0  ;;  %s1670_s0 = inlined_call_operand.<no memory space> [shape: s32[1], index: 0, kind: input, shape index: {}]   ;;  %s1671_s1 = inlined_call_operand.hbm [shape: f32[8,8,32], index: 1, kind: input, shape index: {}]   ;;  %s1672_s2 = inlined_call_operand.vmem [shape: s32[8,1], index: 2, kind: input, shape index: {}]   ;;  %s1673_s3 = inlined_call_operand.hbm [shape: f32[32,128], index: 3, kind: input, shape index: {}]   ;;  %s1674_s4 = inlined_call_operand.hbm [shape: f32[32,128], index: 4, kind: input, shape index: {}]   ;;  %s1675_s5 = inlined_call_operand.vmem [shape: f32[1,128], index: 5, kind: input, shape index: {}]   ;;  %s1676_s6 = inlined_call_operand.hbm [shape: f32[32,128], index: 6, kind: input, shape index: {}]   ;;  %s1677_s7 = inlined_call_operand.vmem [shape: f32[32,128], index: 7, kind: input, shape index: {}]   ;;  %s1678_s8 = inlined_call_operand.vmem [shape: f32[1,128], index: 8, kind: input, shape index: {}]   ;;  %s1679_s9 = inlined_call_operand.hbm [shape: f32[32,128], index: 9, kind: input, shape index: {}]   ;;  %s1680_s10 = inlined_call_operand.vmem [shape: f32[1,128], index: 10, kind: input, shape index: {}]   ;;  %s1681_s11 = inlined_call_operand.hbm [shape: f32[2,8,128], index: 11, kind: output, shape index: {}]  }
   0x1   :  { %18 = vsyncpa [#allocation11], 0 }
   0x2   :  { %19 = vsyncpa [#allocation14], 0 }
   0x3   :  { %20 = vsyncpa [#allocation9], 0  ;;  %s1341_s17 = smov [#allocation10]   ;;  %s1342_s19 = smov [#allocation13]  }
   0x4   :  { %s40_s18 = sshll.u32 %s1341_s17, 4  ;;  %s66_s20 = sshll.u32 %s1342_s19, 4  ;;  %s41_s18 = int_to_ptr.vmem [resolvable:$true] %s40_s18  ;;  %s1423_s20 = int_to_ptr.vmem [resolvable:$true] %s66_s20 }
   0x5   :  { %s1137_s23 = scalar_lea.hbm %s1673_s3, 512 }
   0x6   :  { %p1138_p0 = scmp.ne.s32.totalorder %s1673_s3, %s1137_s23  ;;  %p1141_p1 = scmp.lt.u32.totalorder %s1137_s23, %s1673_s3 }
   0x8   :  { %p1143_p2 = pnand %p1141_p1, %p1138_p0 }
   0xa   :  { %1146 = shalt.err (!%p1143_p2)
}
   0xb   :  { %s1147_s28 = scalar_lea.vmem %s41_s18, 512  ;;  %p1152_p4 = scmp.lt.s32.totalorder %s41_s18, %s41_s18 }
   0xc   :  { %p1148_p3 = scmp.ne.s32.totalorder %s41_s18, %s1147_s28  ;;  %p1153_p5 = scmp.lt.s32.totalorder %s1147_s28, %s1147_s28 }
   0xe   :  { %p1154_p6 = por %p1153_p5, %p1152_p4 }
  0x10   :  { %p1155_p7 = pnand %p1154_p6, %p1148_p3 }
  0x12   :  { %1158 = shalt.err (!%p1155_p7)
}
  0x13   :  { %s1343_s29 = smov 128   ;;  %s1344_s30 = smov 8  }
  0x14   :  { %46 = dma.hbm_to_vmem [thread:$0]  %s1673_s3, 512, %s41_s18, [#allocation11], %s1343_s29, %s1343_s29, %s1344_s30  }
  0x15   :  { %s1159_s16 = scalar_lea.hbm %s1676_s6, 512 }
  0x16   :  { %p1160_p8 = scmp.ne.s32.totalorder %s1676_s6, %s1159_s16  ;;  %p1163_p9 = scmp.lt.u32.totalorder %s1159_s16, %s1676_s6 }
  0x18   :  { %p1165_p10 = pnand %p1163_p9, %p1160_p8 }
  0x1a   :  { %1168 = shalt.err (!%p1165_p10)
}
  0x1b   :  { %s1169_s23 = scalar_lea.vmem %s1423_s20, 512  ;;  %p1174_p12 = scmp.lt.s32.totalorder %s1423_s20, %s1423_s20 }
  0x1c   :  { %p1170_p11 = scmp.ne.s32.totalorder %s1423_s20, %s1169_s23  ;;  %p1175_p13 = scmp.lt.s32.totalorder %s1169_s23, %s1169_s23 }
  0x1e   :  { %p1176_p0 = por %p1175_p13, %p1174_p12 }
  0x20   :  { %p1177_p1 = pnand %p1176_p0, %p1170_p11 }
  0x22   :  { %1180 = shalt.err (!%p1177_p1)
}
  0x23   :  { %72 = dma.hbm_to_vmem [thread:$0]  %s1676_s6, 512, %s1423_s20, [#allocation14], %s1343_s29, %s1343_s29, %s1344_s30  }
  0x24   :  { %s1345_s24 = smov [#allocation7]   ;;  %s1346_s26 = smov [#allocation12]  }
  0x25   :  { %s26_s25 = sshll.u32 %s1345_s24, 4  ;;  %s52_s27 = sshll.u32 %s1346_s26, 4  ;;  %s27_s25 = int_to_ptr.vmem [resolvable:$true] %s26_s25  ;;  %s1460_s27 = int_to_ptr.vmem [resolvable:$true] %s52_s27 }
  0x26   :  { %s1181_s13 = scalar_lea.hbm %s1671_s1, 1024 }
  0x27   :  { %p1182_p2 = scmp.ne.s32.totalorder %s1671_s1, %s1181_s13  ;;  %p1185_p3 = scmp.lt.u32.totalorder %s1181_s13, %s1671_s1 }
  0x29   :  { %p1187_p4 = pnand %p1185_p3, %p1182_p2 }
  0x2b   :  { %1190 = shalt.err (!%p1187_p4)
}
  0x2c   :  { %s1191_s6 = scalar_lea.vmem %s27_s25, 1024  ;;  %p1196_p6 = scmp.lt.s32.totalorder %s27_s25, %s27_s25 }
  0x2d   :  { %p1192_p5 = scmp.ne.s32.totalorder %s27_s25, %s1191_s6  ;;  %p1197_p7 = scmp.lt.s32.totalorder %s1191_s6, %s1191_s6 }
  0x2f   :  { %p1198_p8 = por %p1197_p7, %p1196_p6 }
  0x31   :  { %p1199_p9 = pnand %p1198_p8, %p1192_p5 }
  0x33   :  { %1202 = shalt.err (!%p1199_p9)
}
  0x34   :  { %32 = dma.hbm_to_vmem [thread:$0]  %s1671_s1, 1024, %s27_s25, [#allocation8], %s1343_s29, %s1343_s29, %s1344_s30  }
  0x35   :  { %s1203_s23 = scalar_lea.hbm %s1674_s4, 512 }
  0x36   :  { %p1204_p10 = scmp.ne.s32.totalorder %s1674_s4, %s1203_s23  ;;  %p1207_p11 = scmp.lt.u32.totalorder %s1203_s23, %s1674_s4 }
  0x38   :  { %p1209_p12 = pnand %p1207_p11, %p1204_p10 }
  0x3a   :  { %1212 = shalt.err (!%p1209_p12)
}
  0x3b   :  { %s1213_s28 = scalar_lea.vmem %s1460_s27, 512  ;;  %p1218_p0 = scmp.lt.s32.totalorder %s1460_s27, %s1460_s27 }
  0x3c   :  { %p1214_p13 = scmp.ne.s32.totalorder %s1460_s27, %s1213_s28  ;;  %p1219_p1 = scmp.lt.s32.totalorder %s1213_s28, %s1213_s28 }
  0x3e   :  { %p1220_p2 = por %p1219_p1, %p1218_p0 }
  0x40   :  { %p1221_p3 = pnand %p1220_p2, %p1214_p13 }
  0x42   :  { %1224 = shalt.err (!%p1221_p3)
}
  0x43   :  { %58 = dma.hbm_to_vmem [thread:$0]  %s1674_s4, 512, %s1460_s27, [#allocation11], %s1343_s29, %s1343_s29, %s1344_s30  }
  0x44   :  { %s1347_s12 = smov [#allocation15]   ;;  %s1225_s16 = scalar_lea.hbm %s1679_s9, 512 }
  0x45   :  { %s82_s13 = sshll.u32 %s1347_s12, 4  ;;  %p1226_p4 = scmp.ne.s32.totalorder %s1679_s9, %s1225_s16  ;;  %s83_s13 = int_to_ptr.vmem [resolvable:$true] %s82_s13 }
  0x46   :  { %p1229_p5 = scmp.lt.u32.totalorder %s1225_s16, %s1679_s9 }
  0x48   :  { %p1231_p6 = pnand %p1229_p5, %p1226_p4 }
  0x4a   :  { %1234 = shalt.err (!%p1231_p6)
}
  0x4b   :  { %s1235_s21 = scalar_lea.vmem %s83_s13, 512  ;;  %p1240_p8 = scmp.lt.s32.totalorder %s83_s13, %s83_s13 }
  0x4c   :  { %p1236_p7 = scmp.ne.s32.totalorder %s83_s13, %s1235_s21  ;;  %p1241_p9 = scmp.lt.s32.totalorder %s1235_s21, %s1235_s21 }
  0x4e   :  { %p1242_p10 = por %p1241_p9, %p1240_p8 }
  0x50   :  { %p1243_p11 = pnand %p1242_p10, %p1236_p7 }
  0x52   :  { %1246 = shalt.err (!%p1243_p11)
}
  0x53   :  { %88 = dma.hbm_to_vmem [thread:$0]  %s1679_s9, 512, %s83_s13, [#allocation14], %s1343_s29, %s1343_s29, %s1344_s30  }
  0x54   :  { %1301 = dma.done.wait [#allocation8], 1024  }
  0x55   :  { %1302 = vsyncadd [#allocation8], 4294966272 }
  0x56   :  { %1303 = dma.done.wait [#allocation11], 1024  }
  0x57   :  { %1304 = vsyncadd [#allocation11], 4294966272 }
  0x58   :  { %1305 = dma.done.wait [#allocation14], 1024  }
  0x59   :  { %1306 = vsyncadd [#allocation14], 4294966272  ;;  %vm108_vm0 = vcmask 261120   ;;  %v1348_v0 = vmov 0.0   ;;  %v1523_v1 = vld [vmem:[%s1672_s2] sm:$0xff]  ;;  %v125_v2 = vld [vmem:[#allocation10] sm:$0xff] }
  0x5a   :  { %109 = vst.msk [vmem:[#allocation2] sm:$0xff] %vm108_vm0, %v1348_v0  ;;  %110 = vst.msk [vmem:[#allocation2 + $0x8] sm:$0xff] %vm108_vm0, %v1348_v0  ;;  %v126_v3 = vld [vmem:[#allocation10 + $0x8] sm:$0xff]  ;;  %v127_v5 = vld [vmem:[#allocation10 + $0x10] sm:$0xff]  ;;  %p854_p12 = scmp.le.s32.totalorder %s1670_s0, 0  ;;  %v1539_v33 = vmov 0.0  }
  0x5b   :  { %111 = vst.msk [vmem:[#allocation2 + $0x10] sm:$0xff] %vm108_vm0, %v1348_v0  ;;  %112 = vst.msk [vmem:[#allocation2 + $0x18] sm:$0xff] %vm108_vm0, %v1348_v0  ;;  %v987_v4 = vpack.c.bf16 %v126_v3, %v125_v2  ;;  %v128_v6 = vld [vmem:[#allocation10 + $0x18] sm:$0xff]  ;;  %v117_v7 = vld [vmem:[#allocation7] sm:$0xff]  ;;  %v1545_v34 = vmov (!%p854_p12), 0.0   ;;  %v1547_v35 = vmov (!%p854_p12), 0.0  }
  0x5c   :  { %113 = vst.msk [vmem:[#allocation2 + $0x20] sm:$0xff] %vm108_vm0, %v1348_v0  ;;  %114 = vst.msk [vmem:[#allocation2 + $0x28] sm:$0xff] %vm108_vm0, %v1348_v0  ;;  %v991_v8 = vpack.c.bf16 %v128_v6, %v127_v5  ;;  %922 = vmatprep.mubr.msk.f32.mxu0 %vm108_vm0, %v117_v7  ;;  %v121_v9 = vld [vmem:[#allocation7 + $0x20] sm:$0xff]  ;;  %v118_v10 = vld [vmem:[#allocation7 + $0x8] sm:$0xff]  ;;  %s1549_s26 = smov (!%p854_p12), 0  }
  0x5d   :  { %115 = vst.msk [vmem:[#allocation2 + $0x30] sm:$0xff] %vm108_vm0, %v1348_v0  ;;  %116 = vst.msk [vmem:[#allocation2 + $0x38] sm:$0xff] %vm108_vm0, %v1348_v0  ;;  %988 = vmatprep.subr.bf16.mxu0 %v987_v4  ;;  %1023 = vmatprep.subr.bf16.mxu1 %v987_v4  ;;  %v122_v11 = vld [vmem:[#allocation7 + $0x28] sm:$0xff]  ;;  %v119_v12 = vld [vmem:[#allocation7 + $0x10] sm:$0xff] }
  0x5e   :  { %990 = vmatpush3.bf16.msra.mxu0 %v987_v4  ;;  %1025 = vmatpush3.bf16.msra.mxu1 %v987_v4  ;;  %v123_v13 = vld [vmem:[#allocation7 + $0x30] sm:$0xff]  ;;  %v120_v14 = vld [vmem:[#allocation7 + $0x18] sm:$0xff] }
  0x5f   :  { %992 = vmatprep.subr.bf16.mxu0 %v991_v8  ;;  %1024 = vmatprep.subr.bf16.mxu1 %v991_v8  ;;  %v124_v15 = vld [vmem:[#allocation7 + $0x38] sm:$0xff]  ;;  %v845_v16 = vld [vmem:[%s1675_s5] ss:$0 sm:$0xff] }
  0x60   :  { %928 = vmatprep.mubr.msk.f32.mxu1 %vm108_vm0, %v121_v9 }
  0x62   :  { %994 = vmatpush3.bf16.msra.mxu0 %v991_v8  ;;  %1026 = vmatpush3.bf16.msra.mxu1 %v991_v8 }
  0x65   :  { %923 = vmatmul.mubr.msk.f32.vlgmr.msra.gmra.mrb[0].mxu0 %vm108_vm0, %v118_v10  ;;  %929 = vmatmul.mubr.msk.f32.vlgmr.msra.gmra.mrb[0].mxu1 %vm108_vm0, %v122_v11 }
  0x66   :  { %925 = vmatprep.mubr.msk.f32.mxu0 %vm108_vm0, %v119_v12  ;;  %931 = vmatprep.mubr.msk.f32.mxu1 %vm108_vm0, %v123_v13 }
  0x69   :  { %926 = vmatmul.mubr.msk.f32.gmra.mrb[2].mxu0 %vm108_vm0, %v120_v14  ;;  %932 = vmatmul.mubr.msk.f32.gmra.mrb[2].mxu1 %vm108_vm0, %v124_v15 }
 0x138   :  { %v924_v17 = vpop.f32.mrb[0].mxu0  ;;  %v930_v18 = vpop.f32.mrb[0].mxu1 }
 0x139   :  { %v232_v19 = vadd.f32 %v924_v17, %v845_v16  ;;  %v252_v20 = vadd.f32 %v930_v18, %v845_v16  ;;  %v226_v21 = vpop.f32.mrb[1].mxu0  ;;  %v246_v22 = vpop.f32.mrb[1].mxu1 }
 0x13a   :  { %v227_v23 = vadd.f32 %v845_v16, %v226_v21  ;;  %v247_v24 = vadd.f32 %v845_v16, %v246_v22  ;;  %827 = sbr.rel (%p854_p12) target bundleno = 1141 (0x475), region = 93 }
 0x13b   :  { %266 = vst [vmem:[#allocation3 + $0x8] sm:$0xff] %v232_v19  ;;  %270 = vst [vmem:[#allocation3 + $0x28] sm:$0xff] %v252_v20 }
 0x13c   :  { %265 = vst [vmem:[#allocation3] sm:$0xff] %v227_v23  ;;  %269 = vst [vmem:[#allocation3 + $0x20] sm:$0xff] %v247_v24  ;;  %v927_v25 = vpop.f32.mrb[2].mxu0  ;;  %v933_v26 = vpop.f32.mrb[2].mxu1 }
 0x13d   :  { %v242_v27 = vadd.f32 %v927_v25, %v845_v16  ;;  %v262_v28 = vadd.f32 %v933_v26, %v845_v16  ;;  %v236_v29 = vpop.f32.mrb[3].mxu0  ;;  %v256_v30 = vpop.f32.mrb[3].mxu1 }
 0x13e   :  { %v237_v31 = vadd.f32 %v845_v16, %v236_v29  ;;  %v257_v32 = vadd.f32 %v845_v16, %v256_v30 }
 0x13f   :  { %268 = vst [vmem:[#allocation3 + $0x18] sm:$0xff] %v242_v27  ;;  %272 = vst [vmem:[#allocation3 + $0x38] sm:$0xff] %v262_v28 }
 0x140   :  { %267 = vst [vmem:[#allocation3 + $0x10] sm:$0xff] %v237_v31  ;;  %271 = vst [vmem:[#allocation3 + $0x30] sm:$0xff] %v257_v32 }
 0x141 LB: > { %v284_v36 = vld [vmem:[#allocation12] sm:$0xff]  ;;  %v285_v37 = vld [vmem:[#allocation12 + $0x8] sm:$0xff]  ;;  %v286_v38 = vld [vmem:[#allocation12 + $0x10] sm:$0xff]  ;;  %v1349_v39 = vmov 0.0|0.0   ;;  %s1350_s28 = smov 32   ;;  %vm1351_vm1 = vmmov 0   ;;  %v388_v54 = vstv %s1319_s26  ;;  %s1319_s26 = sphi %s1549_s26, %s276_s26   ;;  %v1315_v35 = vphi %v1547_v35, %v395_v35   ;;  %v1311_v34 = vphi %v1545_v34, %v1682_v34  }
 0x142   : > { %995 = vmatprep.subr.bf16.mxu0 %v1349_v39  ;;  %v996_v40 = vpack.c.bf16 %v285_v37, %v284_v36  ;;  %v287_v41 = vld [vmem:[#allocation12 + $0x18] sm:$0xff]  ;;  %289 = vrot.lane.b32.xlu0 %v1315_v35, %s1350_s28  ;;  %v1352_v42 = vmov 0.0   ;;  %s855_s1 = sshll.u32 %s1319_s26, 3  ;;  %v1353_v49 = vmov 0   ;;  %s1354_s12 = smov 64   ;;  %vm389_vm2 = vcmp.lt.s32.totalorder %v388_v54, %v1523_v1 }
 0x143   : > { %942 = vmatprep.mubr.msk.f32.mxu0 %vm1351_vm1, %v1352_v42  ;;  %v999_v43 = vpack.c.bf16 %v287_v41, %v286_v38  ;;  %s282_s25 = scalar_lea.vmem [#allocation3], %s855_s1  ;;  %1117 = vset.pattern.permute.xlu1 %v1353_v49  ;;  %v390_v58 = vsel %vm389_vm2, 1, %v1353_v49  ;;  %s401_s13 = scalar_lea.vmem [#allocation2], %s855_s1 }
 0x144   : > { %997 = vmatpush3.bf16.msra.mxu0 %v996_v40  ;;  %1118 = vset.pattern.permute.xlu0 %v1353_v49  ;;  %s276_s26 = sadd.s32 1, %s1319_s26  }
 0x145   : > { %998 = vmatprep.subr.bf16.mxu0 %v1349_v39  ;;  %p275_p13 = scmp.ge.s32.totalorder %s276_s26, %s1670_s0 }
 0x147   : > { %v283_v45 = vld [vmem:[%s282_s25] sm:$0xff] }
 0x148   : > { %1000 = vmatpush3.bf16.msra.mxu0 %v999_v43 }
 0x1b4   : > { %v290_v44 = vpop.permute.xlu0 %289 }
 0x1b5   : > { %943 = vmatmul.mubr.msk.f32.vlgmr.msra.gmra.mrb[0].mxu0 %vm108_vm0, %v290_v44 }
 0x288   : > { %v359_v46 = vpop.f32.mrb[0].mxu0 }
 0x289   : > { %v363_v47 = vadd.f32 %v359_v46, %v283_v45  ;;  %v944_v48 = vpop.f32.mrb[1].mxu0 }
 0x28b   : > { %1119 = vtanh.f32 %v363_v47  ;;  %v857_v51 = vmul.f32 -1.442695, %v363_v47 }
 0x28d   : > { %1121 = vpow2.f32 %v857_v51 }
 0x295   : > { %v1120_v50 = vpop.eup %1119 }
 0x296   : > { %373 = vrot.lane.b32.xlu0 %v1120_v50, %s1354_s12 }
 0x297   : > { %v1122_v52 = vpop.eup %1121 }
 0x298   : > { %v367_v53 = vadd.f32 1.0, %v1122_v52 }
 0x29a   : > { %1123 = vrcp.f32 %v367_v53 }
 0x2a4   : > { %v1124_v55 = vpop.eup %1123 }
 0x2a5   : > { %v371_v59 = vmul.f32 %v1311_v34, %v1124_v55 }
 0x308   : > { %v374_v56 = vpop.permute.xlu0 %373 }
 0x309   : > { %v376_v57 = vmul.f32 %v1124_v55, %v374_v56 }
 0x30b   : > { %378 = vrot.lane.b32.xlu1 %v376_v57, %s1350_s28 }
 0x30f   : > { %392 = vperm.xlu1 %1117, %v390_v58  }
 0x37d   : > { %v379_v60 = vpop.permute.xlu1 %378 }
 0x37e   : > { %v381_v61 = vadd.f32 %v379_v60, %v371_v59 }
 0x380   : > { %1125 = vtanh.f32 %v381_v61 }
 0x38a   : > { %v1126_v62 = vpop.eup %1125 }
 0x38b   : > { %384 = vrot.lane.b32.xlu0 %v1126_v62, %s1354_s12 }
 0x38e   : > { %v393_v63 = vpop.permute.xlu1 %392 }
 0x38f   : > { %vm394_vm3 = vcmp.eq.s32.totalorder %v393_v63, 1 }
 0x390   : > { %v396_v0 = vsel %vm394_vm3, %v381_v61, %v1311_v34  }
 0x391   : > { %v1682_v34 = vmov %v396_v0  ;;  %v1683_v33 = vmov (%p275_p13), %v396_v0 }
 0x3fd   : > { %v385_v2 = vpop.permute.xlu0 %384 }
 0x3fe   : > { %v387_v3 = vmul.f32 %v1124_v55, %v385_v2 }
 0x400   : > { %v395_v35 = vsel %vm394_vm3, %v387_v3, %v1315_v35  }
 0x401   : > { %398 = vrot.lane.b32.xlu1 %v395_v35, %s1350_s28 }
 0x46e   :  { %278 = sbr.rel (!%p275_p13) target bundleno = 321 (0x141), region = 99 }
 0x473   : > { %v399_v4 = vpop.permute.xlu1 %398 }
 0x474   : > { %402 = vst.msk [vmem:[%s401_s13] sm:$0xff] %vm108_vm0, %v399_v4 }
 0x475 PF:  { %v416_v5 = vld [vmem:[#allocation13] sm:$0xff]  ;;  %v417_v6 = vld [vmem:[#allocation13 + $0x8] sm:$0xff]  ;;  %v418_v7 = vld [vmem:[#allocation13 + $0x10] sm:$0xff]  ;;  %s1355_s16 = smov 96   ;;  %v1594_v37 = vmov 0.0   ;;  %v1600_v38 = vmov (!%p854_p12), 0.0   ;;  %v1323_v33 = vphi %v1539_v33, %v1683_v33  }
 0x476   :  { %v1001_v8 = vpack.c.bf16 %v417_v6, %v416_v5  ;;  %v419_v9 = vld [vmem:[#allocation13 + $0x18] sm:$0xff]  ;;  %404 = vrot.lane.b32.xlu0 %v1323_v33, %s1355_s16  ;;  %v858_v20 = vld [vmem:[%s1678_s8] ss:$0 sm:$0xff]  ;;  %v1602_v39 = vmov (!%p854_p12), 0.0   ;;  %s1604_s19 = smov (!%p854_p12), 0  }
 0x477   :  { %v1005_v12 = vpack.c.bf16 %v419_v9, %v418_v7 }
 0x478   :  { %1002 = vmatprep.subr.bf16.mxu0 %v1001_v8  ;;  %1027 = vmatprep.subr.bf16.mxu1 %v1001_v8 }
 0x479   :  { %1004 = vmatpush3.bf16.msra.mxu0 %v1001_v8  ;;  %1029 = vmatpush3.bf16.msra.mxu1 %v1001_v8 }
 0x47a   :  { %1006 = vmatprep.subr.bf16.mxu0 %v1005_v12  ;;  %1028 = vmatprep.subr.bf16.mxu1 %v1005_v12 }
 0x47b   :  { %v408_v10 = vld [vmem:[#allocation2] sm:$0xff]  ;;  %v409_v13 = vld [vmem:[#allocation2 + $0x8] sm:$0xff]  ;;  %v410_v15 = vld [vmem:[#allocation2 + $0x10] sm:$0xff] }
 0x47c   :  { %v412_v11 = vld [vmem:[#allocation2 + $0x20] sm:$0xff]  ;;  %953 = vmatprep.mubr.msk.f32.mxu0 %vm108_vm0, %v408_v10  ;;  %v413_v14 = vld [vmem:[#allocation2 + $0x28] sm:$0xff]  ;;  %v414_v16 = vld [vmem:[#allocation2 + $0x30] sm:$0xff] }
 0x47d   :  { %959 = vmatprep.mubr.msk.f32.mxu1 %vm108_vm0, %v412_v11  ;;  %1008 = vmatpush3.bf16.msra.mxu0 %v1005_v12  ;;  %v411_v17 = vld [vmem:[#allocation2 + $0x18] sm:$0xff] }
 0x47e   :  { %1030 = vmatpush3.bf16.msra.mxu1 %v1005_v12  ;;  %v415_v18 = vld [vmem:[#allocation2 + $0x38] sm:$0xff] }
 0x480   :  { %954 = vmatmul.mubr.msk.f32.vlgmr.msra.gmra.mrb[0].mxu0 %vm108_vm0, %v409_v13 }
 0x481   :  { %960 = vmatmul.mubr.msk.f32.vlgmr.msra.gmra.mrb[0].mxu1 %vm108_vm0, %v413_v14  ;;  %956 = vmatprep.mubr.msk.f32.mxu0 %vm108_vm0, %v410_v15 }
 0x482   :  { %962 = vmatprep.mubr.msk.f32.mxu1 %vm108_vm0, %v414_v16 }
 0x484   :  { %957 = vmatmul.mubr.msk.f32.gmra.mrb[2].mxu0 %vm108_vm0, %v411_v17 }
 0x485   :  { %963 = vmatmul.mubr.msk.f32.gmra.mrb[2].mxu1 %vm108_vm0, %v415_v18 }
 0x4e8   :  { %v405_v19 = vpop.permute.xlu0 %404 }
 0x4e9   :  { %407 = vst.msk [vmem:[#allocation4] sm:$0xff] %vm108_vm0, %v405_v19 }
 0x553   :  { %v955_v21 = vpop.f32.mrb[0].mxu0 }
 0x554   :  { %v961_v22 = vpop.f32.mrb[0].mxu1  ;;  %v523_v23 = vadd.f32 %v955_v21, %v858_v20  ;;  %v517_v25 = vpop.f32.mrb[1].mxu0 }
 0x555   :  { %v543_v24 = vadd.f32 %v961_v22, %v858_v20  ;;  %v537_v26 = vpop.f32.mrb[1].mxu1  ;;  %v518_v27 = vadd.f32 %v858_v20, %v517_v25 }
 0x556   :  { %v538_v28 = vadd.f32 %v858_v20, %v537_v26  ;;  %557 = vst [vmem:[#allocation3 + $0x8] sm:$0xff] %v523_v23  ;;  %838 = sbr.rel (%p854_p12) target bundleno = 2193 (0x891), region = 104 }
 0x557   :  { %561 = vst [vmem:[#allocation3 + $0x28] sm:$0xff] %v543_v24  ;;  %556 = vst [vmem:[#allocation3] sm:$0xff] %v518_v27  ;;  %v958_v29 = vpop.f32.mrb[2].mxu0 }
 0x558   :  { %560 = vst [vmem:[#allocation3 + $0x20] sm:$0xff] %v538_v28  ;;  %v964_v30 = vpop.f32.mrb[2].mxu1  ;;  %v533_v31 = vadd.f32 %v958_v29, %v858_v20  ;;  %v527_v33 = vpop.f32.mrb[3].mxu0 }
 0x559   :  { %v553_v32 = vadd.f32 %v964_v30, %v858_v20  ;;  %v547_v34 = vpop.f32.mrb[3].mxu1  ;;  %v528_v35 = vadd.f32 %v858_v20, %v527_v33 }
 0x55a   :  { %v548_v36 = vadd.f32 %v858_v20, %v547_v34  ;;  %559 = vst [vmem:[#allocation3 + $0x18] sm:$0xff] %v533_v31 }
 0x55b   :  { %563 = vst [vmem:[#allocation3 + $0x38] sm:$0xff] %v553_v32  ;;  %558 = vst [vmem:[#allocation3 + $0x10] sm:$0xff] %v528_v35 }
 0x55c   :  { %562 = vst [vmem:[#allocation3 + $0x30] sm:$0xff] %v548_v36 }
 0x55d LB: > { %v575_v40 = vld [vmem:[%s1677_s7] sm:$0xff]  ;;  %v576_v41 = vld [vmem:[%s1677_s7 + $0x8] sm:$0xff]  ;;  %v577_v42 = vld [vmem:[%s1677_s7 + $0x10] sm:$0xff]  ;;  %v1356_v43 = vmov 0.0|0.0   ;;  %s1357_s3 = smov 32   ;;  %vm1358_vm4 = vmmov 0   ;;  %v679_v58 = vstv %s1335_s19  ;;  %s1335_s19 = sphi %s1604_s19, %s567_s19   ;;  %v1331_v39 = vphi %v1602_v39, %v686_v39   ;;  %v1327_v38 = vphi %v1600_v38, %v1684_v38  }
 0x55e   : > { %1009 = vmatprep.subr.bf16.mxu0 %v1356_v43  ;;  %v1010_v44 = vpack.c.bf16 %v576_v41, %v575_v40  ;;  %v578_v45 = vld [vmem:[%s1677_s7 + $0x18] sm:$0xff]  ;;  %580 = vrot.lane.b32.xlu0 %v1331_v39, %s1357_s3  ;;  %v1359_v46 = vmov 0.0   ;;  %s868_s18 = sshll.u32 %s1335_s19, 3  ;;  %v1360_v53 = vmov 0   ;;  %s1361_s26 = smov 64   ;;  %vm680_vm5 = vcmp.lt.s32.totalorder %v679_v58, %v1523_v1 }
 0x55f   : > { %973 = vmatprep.mubr.msk.f32.mxu0 %vm1358_vm4, %v1359_v46  ;;  %v1013_v47 = vpack.c.bf16 %v578_v45, %v577_v42  ;;  %s573_s24 = scalar_lea.vmem [#allocation3], %s868_s18  ;;  %1127 = vset.pattern.permute.xlu1 %v1360_v53  ;;  %v681_v62 = vsel %vm680_vm5, 1, %v1360_v53  ;;  %s692_s28 = scalar_lea.vmem [#allocation2], %s868_s18 }
 0x560   : > { %1011 = vmatpush3.bf16.msra.mxu0 %v1010_v44  ;;  %1128 = vset.pattern.permute.xlu0 %v1360_v53  ;;  %s567_s19 = sadd.s32 1, %s1335_s19  }
 0x561   : > { %1012 = vmatprep.subr.bf16.mxu0 %v1356_v43  ;;  %p566_p0 = scmp.ge.s32.totalorder %s567_s19, %s1670_s0 }
 0x563   : > { %v574_v49 = vld [vmem:[%s573_s24] sm:$0xff] }
 0x564   : > { %1014 = vmatpush3.bf16.msra.mxu0 %v1013_v47 }
 0x5d0   : > { %v581_v48 = vpop.permute.xlu0 %580 }
 0x5d1   : > { %974 = vmatmul.mubr.msk.f32.vlgmr.msra.gmra.mrb[0].mxu0 %vm108_vm0, %v581_v48 }
 0x6a4   : > { %v650_v50 = vpop.f32.mrb[0].mxu0 }
 0x6a5   : > { %v654_v51 = vadd.f32 %v650_v50, %v574_v49  ;;  %v975_v52 = vpop.f32.mrb[1].mxu0 }
 0x6a7   : > { %1129 = vtanh.f32 %v654_v51  ;;  %v870_v55 = vmul.f32 -1.442695, %v654_v51 }
 0x6a9   : > { %1131 = vpow2.f32 %v870_v55 }
 0x6b1   : > { %v1130_v54 = vpop.eup %1129 }
 0x6b2   : > { %664 = vrot.lane.b32.xlu0 %v1130_v54, %s1361_s26 }
 0x6b3   : > { %v1132_v56 = vpop.eup %1131 }
 0x6b4   : > { %v658_v57 = vadd.f32 1.0, %v1132_v56 }
 0x6b6   : > { %1133 = vrcp.f32 %v658_v57 }
 0x6c0   : > { %v1134_v59 = vpop.eup %1133 }
 0x6c1   : > { %v662_v63 = vmul.f32 %v1327_v38, %v1134_v59 }
 0x724   : > { %v665_v60 = vpop.permute.xlu0 %664 }
 0x725   : > { %v667_v61 = vmul.f32 %v1134_v59, %v665_v60 }
 0x727   : > { %669 = vrot.lane.b32.xlu1 %v667_v61, %s1357_s3 }
 0x72b   : > { %683 = vperm.xlu1 %1127, %v681_v62  }
 0x799   : > { %v670_v0 = vpop.permute.xlu1 %669 }
 0x79a   : > { %v672_v2 = vadd.f32 %v670_v0, %v662_v63 }
 0x79c   : > { %1135 = vtanh.f32 %v672_v2 }
 0x7a6   : > { %v1136_v3 = vpop.eup %1135 }
 0x7a7   : > { %675 = vrot.lane.b32.xlu0 %v1136_v3, %s1361_s26 }
 0x7aa   : > { %v684_v4 = vpop.permute.xlu1 %683 }
 0x7ab   : > { %vm685_vm6 = vcmp.eq.s32.totalorder %v684_v4, 1 }
 0x7ac   : > { %v687_v5 = vsel %vm685_vm6, %v672_v2, %v1327_v38  }
 0x7ad   : > { %v1684_v38 = vmov %v687_v5  ;;  %v1685_v37 = vmov (%p566_p0), %v687_v5 }
 0x819   : > { %v676_v6 = vpop.permute.xlu0 %675 }
 0x81a   : > { %v678_v7 = vmul.f32 %v1134_v59, %v676_v6 }
 0x81c   : > { %v686_v39 = vsel %vm685_vm6, %v678_v7, %v1331_v39  }
 0x81d   : > { %689 = vrot.lane.b32.xlu1 %v686_v39, %s1357_s3 }
 0x88a   :  { %569 = sbr.rel (!%p566_p0) target bundleno = 1373 (0x55d), region = 110 }
 0x88f   : > { %v690_v8 = vpop.permute.xlu1 %689 }
 0x890   : > { %693 = vst.msk [vmem:[%s692_s28] sm:$0xff] %vm108_vm0, %v690_v8 }
 0x891 PF:  { %695 = vrot.lane.b32.xlu0 %v1339_v37, %s1355_s16  ;;  %v701_v9 = vld [vmem:[#allocation15] sm:$0xff]  ;;  %v702_v10 = vld [vmem:[#allocation15 + $0x8] sm:$0xff]  ;;  %v703_v11 = vld [vmem:[#allocation15 + $0x10] sm:$0xff]  ;;  %s1362_s12 = smov [#allocation16]   ;;  %v1339_v37 = vphi %v1594_v37, %v1685_v37  }
 0x892   :  { %v1015_v12 = vpack.c.bf16 %v702_v10, %v701_v9  ;;  %v704_v13 = vld [vmem:[#allocation15 + $0x18] sm:$0xff]  ;;  %v699_v14 = vld [vmem:[#allocation4] sm:$0xff]  ;;  %s801_s13 = sshll.u32 %s1362_s12, 4  ;;  %s802_s13 = int_to_ptr.vmem [resolvable:$true] %s801_s13 }
 0x893   :  { %v1019_v15 = vpack.c.bf16 %v704_v13, %v703_v11  ;;  %984 = vmatprep.mubr.msk.f32.mxu0 %vm108_vm0, %v699_v14  ;;  %v871_v17 = vld [vmem:[%s1680_s10] ss:$0 sm:$0xff]  ;;  %s1247_s14 = scalar_lea.vmem %s802_s13, 256  ;;  %p1252_p2 = scmp.lt.s32.totalorder %s802_s13, %s802_s13 }
 0x894   :  { %1016 = vmatprep.subr.bf16.mxu0 %v1015_v12  ;;  %p1248_p1 = scmp.ne.s32.totalorder %s802_s13, %s1247_s14  ;;  %p1253_p3 = scmp.lt.s32.totalorder %s1247_s14, %s1247_s14 }
 0x895   :  { %1018 = vmatpush3.bf16.msra.mxu0 %v1015_v12 }
 0x896   :  { %1020 = vmatprep.subr.bf16.mxu0 %v1019_v15  ;;  %p1254_p4 = por %p1253_p3, %p1252_p2 }
 0x898   :  { %p1255_p5 = pnand %p1254_p4, %p1248_p1 }
 0x899   :  { %1022 = vmatpush3.bf16.msra.mxu0 %v1019_v15 }
 0x903   :  { %v696_v1 = vpop.permute.xlu0 %695 }
 0x904   :  { %698 = vst.msk [vmem:[#allocation4 + $0x8] sm:$0xff] %vm108_vm0, %v696_v1 }
 0x90b   :  { %v700_v16 = vld [vmem:[#allocation4 + $0x8] sm:$0xff] }
 0x90c   :  { %985 = vmatmul.mubr.msk.f32.vlgmr.msra.gmra.mrb[0].mxu0 %vm108_vm0, %v700_v16 }
 0x9df   :  { %v986_v18 = vpop.f32.mrb[0].mxu0 }
 0x9e0   :  { %v790_v19 = vadd.f32 %v986_v18, %v871_v17  ;;  %v784_v20 = vpop.f32.mrb[1].mxu0 }
 0x9e1   :  { %v785_v21 = vadd.f32 %v871_v17, %v784_v20 }
 0x9e2   :  { %795 = vst [vmem:[#allocation16 + $0x8] sm:$0xff] %v790_v19 }
 0x9e3   :  { %793 = vst [vmem:[#allocation16] sm:$0xff] %v785_v21 }
 0x9e4   :  { %1258 = shalt.err (!%p1255_p5)
}
 0x9e5   :  { %s1259_s10 = scalar_lea.hbm %s1681_s11, 256 }
 0x9e6   :  { %p1260_p6 = scmp.ne.s32.totalorder %s1681_s11, %s1259_s10  ;;  %p1263_p7 = scmp.lt.u32.totalorder %s1259_s10, %s1681_s11 }
 0x9e8   :  { %p1265_p8 = pnand %p1263_p7, %p1260_p6 }
 0x9ea   :  { %1268 = shalt.err (!%p1265_p8)
}
 0x9eb   :  { %807 = dma.vmem_to_hbm [thread:$0]  %s802_s13, 256, %s1681_s11, [#allocation9], %s1343_s29, %s1343_s29, %s1344_s30  }
 0x9ec   :  { %1307 = dma.done.wait [#allocation9], 256  }
 0x9ed   :  { %1308 = vsyncadd [#allocation9], 4294967040 }
 0x9ee   :  { %811 = vsyncpa [#allocation8], 1 }
 0x9ef   :  { %812 = vsyncpa [#allocation11], 1 }
 0x9f0   :  { %813 = vsyncpa [#allocation14], 1 }
 0x9f1   :  { %814 = vsyncpa [#allocation9], 1 }

</bundles_post_ra>
